<compile_context>
chip_gen: v5e
topology: v5e:2x2
jax: 0.10.0
libtpu: 0.0.40
codegen_flags: <defaults>
</compile_context>

<pallas_src>
import jax
import jax.numpy as jnp
from jax.experimental import pallas as pl
from jax.experimental.pallas import tpu as pltpu

BN_EPS = 1e-5
LANE = 128  # TPU lane width; output-tile and K padding granularity.


def _round_up(x: int, m: int) -> int:
    return ((x + m - 1) // m) * m


def mlp_layer_kernel(x_ref, w_ref, gb_ref, o_ref):
    # Linear on the MXU: x (N, Kp) bf16 @ W (Kp, tn) bf16 -> f32 accumulator.
    # The Linear bias is omitted: it cancels exactly under training-mode BN.
    y = jnp.dot(x_ref[...], w_ref[...], preferred_element_type=jnp.float32)  # (N, tn)

    # BatchNorm1d (training mode), folded into a single scale/shift.
    # Batch axis is whole inside every tile, so statistics are exact.
    mean = jnp.mean(y, axis=0, keepdims=True)                    # (1, tn)
    centered = y - mean
    var = jnp.mean(centered * centered, axis=0, keepdims=True)   # biased variance
    gamma = gb_ref[0:1, :]                                       # (1, tn) f32
    beta = gb_ref[1:2, :]                                        # (1, tn) f32
    scale = gamma * jax.lax.rsqrt(var + BN_EPS)                  # rsqrt -> EUP slot
    z = centered * scale + beta

    # ReLU6, lane-dense unmasked store.
    o_ref[...] = jnp.clip(z, 0.0, 6.0).astype(o_ref.dtype)


def mlp_layer(x, weight, bias, gamma, beta, *, tn: int = 256):
    """x: (N, F_in) f32; weight: (F_out, F_in) PyTorch layout; bias/gamma/beta: (F_out,).

    `bias` is accepted for API fidelity but is mathematically redundant under
    training-mode BatchNorm (it cancels in the mean subtraction), so it is not
    fed to the kernel.
    """
    del bias  # cancels exactly in y - mean(y) and in var(y)
    n, f_in = x.shape
    f_out = weight.shape[0]

    # Pad to MXU / vreg friendly shapes. N is NOT padded (and never tiled) so
    # the BatchNorm batch statistics stay exact.
    f_in_p = _round_up(f_in, LANE)
    f_out_128 = _round_up(f_out, LANE)
    tn_eff = max(LANE, min(tn, f_out_128))        # multiple of 128, no over-padding
    f_out_p = _round_up(f_out, tn_eff)

    # bf16 operands for the MXU (f32 accumulation inside the kernel).
    x_p = jnp.pad(x, ((0, 0), (0, f_in_p - f_in))).astype(jnp.bfloat16)
    # One-time transpose to (Kp, F_out_p) so the kernel does a plain K-major
    # contraction with no in-kernel transpose.
    w_t = jnp.pad(weight, ((0, f_out_p - f_out), (0, f_in_p - f_in))).T
    w_t = w_t.astype(jnp.bfloat16)                               # (Kp, F_out_p)
    # gamma/beta stacked -> a single tiny per-step DMA.
    g_p = jnp.pad(gamma.astype(jnp.float32), (0, f_out_p - f_out), constant_values=1.0)
    b_p = jnp.pad(beta.astype(jnp.float32), (0, f_out_p - f_out))
    gb = jnp.stack([g_p, b_p], axis=0)                           # (2, F_out_p) f32

    grid = (pl.cdiv(f_out_p, tn_eff),)

    out_dtype = x.dtype
    cost = pl.CostEstimate(
        flops=2 * n * f_in_p * f_out_p,
        transcendentals=f_out_p,  # one rsqrt per output feature
        bytes_accessed=(x_p.size * 2 + w_t.size * 2 + gb.size * 4
                        + n * f_out_p * jnp.dtype(out_dtype).itemsize),
    )

    out_p = pl.pallas_call(
        mlp_layer_kernel,
        out_shape=jax.ShapeDtypeStruct((n, f_out_p), out_dtype),
        grid=grid,
        in_specs=[
            pl.BlockSpec((n, f_in_p), lambda j: (0, 0)),      # x: full batch, full K
            pl.BlockSpec((f_in_p, tn_eff), lambda j: (0, j)), # W tile: tn output cols
            pl.BlockSpec((2, tn_eff), lambda j: (0, j)),      # [gamma; beta] tile
        ],
        out_specs=pl.BlockSpec((n, tn_eff), lambda j: (0, j)),  # lane-dense output tile
        compiler_params=pltpu.CompilerParams(
            dimension_semantics=("parallel",),   # F_out tiles are independent
            vmem_limit_bytes=32 * 1024 * 1024,   # > v5e's 16 MiB default scoped window
        ),
        cost_estimate=cost,
    )(x_p, w_t, gb)

    return out_p[:, :f_out]


def reference(x, weight, bias, gamma, beta):
    """Matches the kernel's math: bf16 matmul operands, f32 BN/ReLU6.

    (vs. the pure-f32 PyTorch forward the only difference is bf16 rounding of
    the Linear output; the Linear bias cancels exactly under training-mode BN.)
    """
    y = jnp.dot(x.astype(jnp.bfloat16), weight.astype(jnp.bfloat16).T,
                preferred_element_type=jnp.float32)
    del bias  # cancels in mean subtraction below
    mean = jnp.mean(y, axis=0, keepdims=True)
    var = jnp.mean((y - mean) ** 2, axis=0, keepdims=True)
    y_hat = (y - mean) / jnp.sqrt(var + BN_EPS)
    z = y_hat * gamma + beta
    return jnp.clip(z, 0.0, 6.0)


if __name__ == "__main__":
    key = jax.random.PRNGKey(0)
    batch, in_features, out_features = 8, 16, 32

    kx, kw, kb = jax.random.split(key, 3)
    x = jax.random.normal(kx, (batch, in_features), dtype=jnp.float32)

    # Deterministic init mimicking PyTorch Linear defaults: U(-1/sqrt(fan_in), 1/sqrt(fan_in)).
    bound = 1.0 / jnp.sqrt(jnp.float32(in_features))
    weight = jax.random.uniform(kw, (out_features, in_features),
                                minval=-bound, maxval=bound, dtype=jnp.float32)
    bias = jax.random.uniform(kb, (out_features,),
                              minval=-bound, maxval=bound, dtype=jnp.float32)
    gamma = jnp.ones((out_features,), dtype=jnp.float32)   # BatchNorm1d weight init
    beta = jnp.zeros((out_features,), dtype=jnp.float32)   # BatchNorm1d bias init

    out = mlp_layer(x, weight, bias, gamma, beta)
    out = jax.block_until_ready(out)

    ref = reference(x, weight, bias, gamma, beta)
    assert out.shape == (batch, out_features)
    assert jnp.allclose(out, ref, atol=1e-3, rtol=1e-3), "mismatch vs reference"
    print("KERNEL_OK")
</pallas_src>

<mosaic_0001>
module attributes {stable_mosaic.version = 11 : i64} {
  func.func @mlp_layer_kernel(%arg0: i32, %arg1: memref<8x128xbf16, #tpu.memory_space<vmem>>, %arg2: memref<128x128xbf16, #tpu.memory_space<vmem>>, %arg3: memref<2x128xf32, #tpu.memory_space<vmem>>, %arg4: memref<8x128xf32, #tpu.memory_space<vmem>>) attributes {dimension_semantics = [#tpu.dimension_semantics<parallel>], iteration_bounds = array<i64: 1>, scalar_prefetch = 0 : i64, scratch_operands = 0 : i64, tpu.core_type = #tpu.core_type<tc>, window_params = [{pipeline_mode = #tpu.pipeline_mode<synchronous>, transform_indices = @transform_0, window_bounds = array<i64: 8, 128>}, {transform_indices = @transform_1, window_bounds = array<i64: 128, 128>}, {transform_indices = @transform_2, window_bounds = array<i64: 2, 128>}, {transform_indices = @transform_3, window_bounds = array<i64: 8, 128>}]} {
    %c0 = arith.constant 0 : index
    %c0_0 = arith.constant 0 : index
    %0 = vector.load %arg1[%c0, %c0_0] : memref<8x128xbf16, #tpu.memory_space<vmem>>, vector<8x128xbf16>
    %c0_1 = arith.constant 0 : index
    %c0_2 = arith.constant 0 : index
    %1 = vector.load %arg2[%c0_1, %c0_2] : memref<128x128xbf16, #tpu.memory_space<vmem>>, vector<128x128xbf16>
    %cst = arith.constant dense<0.000000e+00> : vector<8x128xf32>
    %2 = tpu.matmul %0, %1, %cst {dimension_numbers = #tpu.dot_dimension_numbers<[1], [0], [0], [1], [0, 0, 1, 1], [], []>} : vector<8x128xbf16>, vector<128x128xbf16>, vector<8x128xf32> -> vector<8x128xf32>
    %cst_3 = arith.constant dense<0.000000e+00> : vector<128xf32>
    %3 = vector.multi_reduction <add>, %2, %cst_3 [0] : vector<8x128xf32> to vector<128xf32>
    %4 = vector.shape_cast %3 : vector<128xf32> to vector<1x128xf32>
    %cst_4 = arith.constant 8.000000e+00 : f32
    %5 = vector.broadcast %cst_4 : f32 to vector<1x128xf32>
    %6 = arith.divf %4, %5 : vector<1x128xf32>
    %7 = vector.broadcast %6 : vector<1x128xf32> to vector<8x128xf32>
    %8 = arith.subf %2, %7 : vector<8x128xf32>
    %9 = arith.mulf %8, %8 : vector<8x128xf32>
    %cst_5 = arith.constant dense<0.000000e+00> : vector<128xf32>
    %10 = vector.multi_reduction <add>, %9, %cst_5 [0] : vector<8x128xf32> to vector<128xf32>
    %11 = vector.shape_cast %10 : vector<128xf32> to vector<1x128xf32>
    %cst_6 = arith.constant 8.000000e+00 : f32
    %12 = vector.broadcast %cst_6 : f32 to vector<1x128xf32>
    %13 = arith.divf %11, %12 : vector<1x128xf32>
    %c0_7 = arith.constant 0 : index
    %c0_8 = arith.constant 0 : index
    %14 = vector.load %arg3[%c0_7, %c0_8] : memref<2x128xf32, #tpu.memory_space<vmem>>, vector<1x128xf32>
    %c1 = arith.constant 1 : index
    %c0_9 = arith.constant 0 : index
    %15 = vector.load %arg3[%c1, %c0_9] : memref<2x128xf32, #tpu.memory_space<vmem>>, vector<1x128xf32>
    %cst_10 = arith.constant 9.99999974E-6 : f32
    %16 = vector.broadcast %cst_10 : f32 to vector<1x128xf32>
    %17 = arith.addf %13, %16 : vector<1x128xf32>
    %18 = math.rsqrt %17 : vector<1x128xf32>
    %19 = arith.mulf %14, %18 : vector<1x128xf32>
    %20 = vector.broadcast %19 : vector<1x128xf32> to vector<8x128xf32>
    %21 = arith.mulf %8, %20 : vector<8x128xf32>
    %22 = vector.broadcast %15 : vector<1x128xf32> to vector<8x128xf32>
    %23 = arith.addf %21, %22 : vector<8x128xf32>
    %cst_11 = arith.constant 0.000000e+00 : f32
    %cst_12 = arith.constant 6.000000e+00 : f32
    %24 = vector.broadcast %cst_11 : f32 to vector<8x128xf32>
    %25 = arith.maximumf %24, %23 : vector<8x128xf32>
    %26 = vector.broadcast %cst_12 : f32 to vector<8x128xf32>
    %27 = arith.minimumf %26, %25 : vector<8x128xf32>
    %c0_13 = arith.constant 0 : index
    %c0_14 = arith.constant 0 : index
    %28 = vector.load %arg4[%c0_13, %c0_14] : memref<8x128xf32, #tpu.memory_space<vmem>>, vector<8x128xf32>
    tpu.vector_store %arg4[%c0_13, %c0_14], %27 {strides = array<i32>} : memref<8x128xf32, #tpu.memory_space<vmem>>, vector<8x128xf32>,
    return
  }
  func.func @transform_0(%arg0: i32) -> (i32, i32) {
    %c0_i32 = arith.constant 0 : i32
    %c0_i32_0 = arith.constant 0 : i32
    %c0_i32_1 = arith.constant 0 : i32
    return %c0_i32, %c0_i32_0 : i32, i32
  }
  func.func @transform_1(%arg0: i32) -> (i32, i32) {
    %c0_i32 = arith.constant 0 : i32
    %c0_i32_0 = arith.constant 0 : i32
    return %c0_i32, %arg0 : i32, i32
  }
  func.func @transform_2(%arg0: i32) -> (i32, i32) {
    %c0_i32 = arith.constant 0 : i32
    %c0_i32_0 = arith.constant 0 : i32
    return %c0_i32, %arg0 : i32, i32
  }
  func.func @transform_3(%arg0: i32) -> (i32, i32) {
    %c0_i32 = arith.constant 0 : i32
    %c0_i32_0 = arith.constant 0 : i32
    return %c0_i32, %arg0 : i32, i32
  }
}

</mosaic_0001>

<bundles_post_ra>
// kernel: tpu_custom_call.1
= control target key start
LH: loop header
LB: loop body
LE: loop exit
PB: predicated region body
PF: predicated region fallthrough
CT: control target
= control target key end

     0   :  { %8 = vsyncpa [#allocation3], 0  ;;  %s391_s0 = inlined_call_operand.hbm [shape: bf16[8,128], index: 0, kind: input, shape index: {}]   ;;  %s392_s1 = inlined_call_operand.hbm [shape: bf16[128,128], index: 1, kind: input, shape index: {}]   ;;  %s393_s2 = inlined_call_operand.hbm [shape: f32[2,128], index: 2, kind: input, shape index: {}]   ;;  %s394_s3 = inlined_call_operand.hbm [shape: f32[8,128], index: 3, kind: output, shape index: {}]  }
   0x1   :  { %9 = vsyncpa [#allocation6], 0  ;;  %s26_s14 = sshll.u32 %s392_s1, 4  ;;  %s27_s14 = int_to_ptr.hbm [resolvable:$true] %s26_s14 }
   0x2   :  { %10 = vsyncpa [#allocation4], 0  ;;  %s352_s15 = smov [#allocation5]   ;;  %s16_s19 = sshll.u32 %s391_s0, 4  ;;  %s17_s19 = int_to_ptr.hbm [resolvable:$true] %s16_s19 }
   0x3   :  { %s28_s16 = sshll.u32 %s352_s15, 4  ;;  %s353_s20 = smov 64   ;;  %s29_s16 = int_to_ptr.vmem [resolvable:$true] %s28_s16 }
   0x4   :  { %s354_s21 = smov 4   ;;  %s355_s22 = smov [#allocation2]  }
   0x5   :  { %34 = dma.hbm_to_vmem [thread:$0]  %s27_s14, 1024, %s29_s16, [#allocation6], %s353_s20, %s353_s20, %s354_s21  }
   0x6   :  { %s18_s23 = sshll.u32 %s355_s22, 4  ;;  %s40_s26 = sshll.u32 %s393_s2, 4  ;;  %s19_s23 = int_to_ptr.vmem [resolvable:$true] %s18_s23  ;;  %s41_s26 = int_to_ptr.hbm [resolvable:$true] %s40_s26 }
   0x7   :  { %21 = dma.hbm_to_vmem [thread:$0]  %s17_s19, 64, %s19_s23, [#allocation3]  }
   0x8   :  { %s356_s1 = smov [#allocation7]  }
   0x9   :  { %s42_s27 = sshll.u32 %s356_s1, 4  ;;  %s43_s27 = int_to_ptr.vmem [resolvable:$true] %s42_s27 }
   0xa   :  { %45 = dma.hbm_to_vmem [thread:$0]  %s41_s26, 32, %s43_s27, [#allocation6]  }
   0xb   :  { %346 = dma.done.wait [#allocation3], 64  }
   0xc   :  { %347 = vsyncadd [#allocation3], 4294967232 }
   0xd   :  { %348 = dma.done.wait [#allocation6], 1056  }
   0xe   :  { %349 = vsyncadd [#allocation6], 4294966240  ;;  %v237_v0 = vld [vmem:[#allocation5 + $0x38] sm:$0xff]  ;;  %v236_v1 = vld [vmem:[#allocation5 + $0x30] sm:$0xff]  ;;  %v357_v9 = vmov 8.0   ;;  %s358_s0 = smov [#allocation8]  }
   0xf   :  { %123 = vmatpush.bf16.msra.mxu0 %v237_v0  ;;  %v235_v2 = vld [vmem:[#allocation5 + $0x28] sm:$0xff]  ;;  %v234_v3 = vld [vmem:[#allocation5 + $0x20] sm:$0xff]  ;;  %v233_v4 = vld [vmem:[#allocation5 + $0x18] sm:$0xff]  ;;  %246 = vrcp.f32 %v357_v9  ;;  %s185_s2 = sshll.u32 %s358_s0, 4  ;;  %s187_s30 = sshll.u32 %s394_s3, 4  ;;  %s186_s2 = int_to_ptr.vmem [resolvable:$true] %s185_s2  ;;  %s188_s30 = int_to_ptr.hbm [resolvable:$true] %s187_s30 }
  0x10   :  { %v232_v5 = vld [vmem:[#allocation5 + $0x10] sm:$0xff]  ;;  %v231_v6 = vld [vmem:[#allocation5 + $0x8] sm:$0xff]  ;;  %v230_v7 = vld [vmem:[#allocation5] sm:$0xff] }
  0x11   :  { %v58_v8 = vld [vmem:[#allocation2] sm:$0xf]  ;;  %v159_v40 = vld [vmem:[#allocation7] sm:$0x1]  ;;  %v245_v45 = vld [vmem:[#allocation7 + $0x1] ss:$0 sm:$0xff] }
  0x13   :  { %124 = vmatpush.bf16.msra.mxu0 %v236_v1 }
  0x15   :  { %v247_v10 = vpop.eup %246 }
  0x16   :  { %v143_v11 = vmul.f32 8.0, %v247_v10  ;;  %vm147_vm0 = vweird.f32 %v247_v10 }
  0x17   :  { %125 = vmatpush.bf16.msra.mxu0 %v235_v2 }
  0x18   :  { %v144_v12 = vsub.f32 1.0, %v143_v11 }
  0x1a   :  { %v145_v15 = vmul.f32 %v247_v10, %v144_v12 }
  0x1b   :  { %126 = vmatpush.bf16.msra.mxu0 %v234_v3 }
  0x1c   :  { %v146_v18 = vadd.f32 %v247_v10, %v145_v15 }
  0x1e   :  { %v148_v22 = vsel %vm147_vm0, %v247_v10, %v146_v18 }
  0x1f   :  { %127 = vmatpush.bf16.msra.mxu0 %v233_v4 }
  0x23   :  { %128 = vmatpush.bf16.msra.mxu0 %v232_v5 }
  0x27   :  { %129 = vmatpush.bf16.msra.mxu0 %v231_v6 }
  0x2b   :  { %130 = vmatpush.bf16.msra.mxu0 %v230_v7 }
  0x2e   :  { %131 = vmatmul.bf16.vlgmr.msra.gmra.mxu0 %v58_v8 }
  0xab   :  { %v132_v13 = vpop.f32.mrf.mxu0 }
  0xac   :  { %v136_v14 = vrot.slane %v132_v13, 4 }
  0xae   :  { %v137_v16 = vadd.f32 %v136_v14, %v132_v13 }
  0xb0   :  { %v138_v17 = vrot.slane %v137_v16, 2 }
  0xb2   :  { %v139_v19 = vadd.f32 %v138_v17, %v137_v16 }
  0xb3   :  { %v134_v20 = vpop.f32.mrf.mxu0 }
  0xb4   :  { %v140_v21 = vrot.slane %v139_v19, 1 }
  0xb6   :  { %v141_v23 = vadd.f32 %v140_v21, %v139_v19 }
  0xb8   :  { %v149_v24 = vmul.f32 %v148_v22, %v141_v23 }
  0xba   :  { %v150_v25 = vsub.f32 %v132_v13, %v149_v24 }
  0xbc   :  { %v151_v26 = vmul.f32 %v150_v25, %v150_v25 }
  0xbe   :  { %v152_v27 = vrot.slane %v151_v26, 4 }
  0xc0   :  { %v153_v28 = vadd.f32 %v152_v27, %v151_v26 }
  0xc2   :  { %v154_v29 = vrot.slane %v153_v28, 2 }
  0xc4   :  { %v155_v30 = vadd.f32 %v154_v29, %v153_v28 }
  0xc6   :  { %v156_v31 = vrot.slane %v155_v30, 1 }
  0xc8   :  { %v157_v32 = vadd.f32 %v156_v31, %v155_v30 }
  0xca   :  { %v158_v33 = vmul.f32 %v157_v32, %v148_v22 }
  0xcc   :  { %v161_v34 = vadd.f32 1e-05, %v158_v33 }
  0xce   :  { %248 = vrsqrt.f32 %v161_v34  ;;  %vm168_vm2 = vweird.f32 %v161_v34 }
  0xd4   :  { %v249_v35 = vpop.eup %248 }
  0xd5   :  { %v163_v36 = vmul.f32 %v249_v35, %v161_v34  ;;  %vm169_vm1 = vweird.f32 %v249_v35 }
  0xd6   :  { %vm170_vm3 = vmor %vm168_vm2, %vm169_vm1 }
  0xd7   :  { %v164_v37 = vmul.f32 %v249_v35, %v163_v36 }
  0xd9   :  { %v165_v38 = vmul.f32 0.5, %v164_v37 }
  0xdb   :  { %v166_v39 = vsub.f32 1.5, %v165_v38 }
  0xdd   :  { %v167_v41 = vmul.f32 %v249_v35, %v166_v39 }
  0xdf   :  { %v171_v42 = vsel %vm170_vm3, %v249_v35, %v167_v41 }
  0xe0   :  { %v172_v43 = vmul.f32 %v171_v42, %v159_v40 }
  0xe2   :  { %v173_v44 = vperm.slane %v172_v43, 0 }
  0xe4   :  { %v174_v46 = vmul.f32 %v173_v44, %v150_v25 }
  0xe6   :  { %v176_v47 = vadd.f32 %v245_v45, %v174_v46 }
  0xe8   :  { %v177_v48 = vmax.f32 %v176_v47, 0.0 }
  0xea   :  { %v178_v49 = vmin.f32 %v177_v48, 6.0 }
  0xec   :  { %179 = vst [vmem:[#allocation8] sm:$0xff] %v178_v49 }
  0xed   :  { %190 = dma.vmem_to_hbm [thread:$0]  %s186_s2, 128, %s188_s30, [#allocation4]  }
  0xee   :  { %350 = dma.done.wait [#allocation4], 128  }
  0xef   :  { %351 = vsyncadd [#allocation4], 4294967168 }
  0xf0   :  { %195 = vsyncpa [#allocation3], 1 }
  0xf1   :  { %196 = vsyncpa [#allocation6], 1 }
  0xf2   :  { %197 = vsyncpa [#allocation4], 1 }

</bundles_post_ra>
